<compile_context>
chip_gen: v5e
topology: v5e:2x2
jax: 0.10.0
libtpu: 0.0.40
codegen_flags: <defaults>
</compile_context>

<pallas_src>
import jax
import jax.numpy as jnp
from jax.experimental import pallas as pl
from jax.experimental.pallas import tpu as pltpu


# ----------------------------------------------------------------------------
# helpers
# ----------------------------------------------------------------------------

def _round_up(x, m):
    return ((x + m - 1) // m) * m


def _vmem_budget_bytes():
    """~3/4 of physical VMEM: ~96 MiB on v5e/v6e (128 MiB), ~48 MiB on v7x."""
    cap = None
    try:
        info = pltpu.get_tpu_info()
        cap = getattr(info, "vmem_capacity_bytes", None)
    except Exception:
        cap = None
    if not cap:
        cap = 64 * 2**20          # conservative (v7x-sized) fallback
    return int(cap * 3 // 4)


def _largest_divisor_tile(n_pad, cap):
    """Largest multiple of 128 that is <= cap and divides n_pad (n_pad % 128 == 0)."""
    cap = max(128, (cap // 128) * 128)
    t = min(cap, n_pad)
    t = (t // 128) * 128
    while n_pad % t != 0:
        t -= 128
    return t


def _choose_tiles(batch, dim_in, n_pad, x_bytes, w_bytes, out_bytes, budget):
    """Pick (bm, tn) so the double-buffered tile footprint fits the VMEM budget."""
    big = budget >= 64 * 2**20            # 128-MiB parts get the larger caps
    tn_cap = 2048 if big else 1024
    bm_cap = 512 if big else 256

    tn = _largest_divisor_tile(n_pad, tn_cap)
    bm = min(_round_up(batch, 16), bm_cap)   # 16-row align: bf16 & f32 sublane packs

    def footprint(bm_, tn_):
        return 2 * (bm_ * dim_in * x_bytes      # x tile (double-buffered)
                    + dim_in * tn_ * w_bytes    # weight tile
                    + tn_ * 4                   # bias tile
                    + bm_ * tn_ * out_bytes)    # output tile

    while footprint(bm, tn) > budget and tn > 128:
        tn = _largest_divisor_tile(n_pad, tn - 128)
    while footprint(bm, tn) > budget and bm > 16:
        bm = max(16, ((bm // 2) // 16) * 16)
    return bm, tn, footprint(bm, tn)


# ----------------------------------------------------------------------------
# kernel
# ----------------------------------------------------------------------------

def _linear_relu_kernel(x_ref, w_ref, b_ref, o_ref):
    # x_ref: (bm, dim_in)   w_ref: (dim_in, tn)   b_ref: (1, tn) f32
    # o_ref: (bm, tn) out_dtype
    y = jnp.dot(x_ref[...], w_ref[...], preferred_element_type=jnp.float32)
    y = y + b_ref[...]                              # bias broadcast over rows
    o_ref[...] = jnp.maximum(y, 0.0).astype(o_ref.dtype)   # fused ReLU + cast


def fused_linear_relu(x, w_t, b2d, *, out_dtype=jnp.float32):
    """relu(x @ w_t + b) with column-resident weight streaming.

    x:   (batch, dim_in)  cast to w_t.dtype for the MXU (f32 accumulate)
    w_t: (dim_in, n_pad)  pre-transposed weights, n_pad % 128 == 0
    b2d: (1, n_pad)       f32 bias
    returns (batch, n_pad) out_dtype
    """
    batch, dim_in = x.shape
    k2, n_pad = w_t.shape
    assert k2 == dim_in and n_pad % 128 == 0 and b2d.shape == (1, n_pad)

    x = x.astype(w_t.dtype)
    x_bytes = jnp.dtype(x.dtype).itemsize
    w_bytes = jnp.dtype(w_t.dtype).itemsize
    out_bytes = jnp.dtype(out_dtype).itemsize

    budget = _vmem_budget_bytes()
    bm, tn, footprint = _choose_tiles(batch, dim_in, n_pad,
                                      x_bytes, w_bytes, out_bytes, budget)

    batch_p = _round_up(batch, bm)
    if batch_p != batch:
        x = jnp.pad(x, ((0, batch_p - batch), (0, 0)))

    # Columns OUTER, batch inner: weight/bias tiles depend only on the outer
    # axis -> fetched once each and VMEM-resident across the inner batch sweep.
    grid = (n_pad // tn, batch_p // bm)

    vmem_limit = int(min(budget, max(2 * footprint + (4 << 20), 8 << 20)))

    cost = pl.CostEstimate(
        flops=2 * batch_p * dim_in * n_pad,
        transcendentals=0,
        bytes_accessed=(grid[0] * batch_p * dim_in * x_bytes   # x re-read per column tile
                        + dim_in * n_pad * w_bytes             # weights: exactly once
                        + n_pad * 4                            # bias
                        + batch_p * n_pad * out_bytes),        # output write
    )

    out = pl.pallas_call(
        _linear_relu_kernel,
        out_shape=jax.ShapeDtypeStruct((batch_p, n_pad), out_dtype),
        grid_spec=pl.GridSpec(
            grid=grid,
            in_specs=[
                pl.BlockSpec((bm, dim_in), lambda j, i: (i, 0)),
                pl.BlockSpec((dim_in, tn), lambda j, i: (0, j)),  # j-only -> resident
                pl.BlockSpec((1, tn), lambda j, i: (0, j)),       # j-only -> resident
            ],
            out_specs=pl.BlockSpec((bm, tn), lambda j, i: (i, j)),
        ),
        compiler_params=pltpu.CompilerParams(
            # Leading (column) axis is the parallel one: a v7x 2-TC split shards
            # columns, keeping total weight HBM traffic at 1x.
            dimension_semantics=("parallel", "arbitrary"),
            vmem_limit_bytes=vmem_limit,
        ),
        cost_estimate=cost,
    )(x, w_t, b2d)

    return out[:batch] if batch_p != batch else out


# ----------------------------------------------------------------------------
# module
# ----------------------------------------------------------------------------

class ParamGeneratorPallas:
    """JAX/Pallas port of ParamGenerator(dim_in, dim_out).

    Two heads, each its own lane-dense pallas_call output (padded independently
    to a multiple of 128), so no padded fused slab has to be column-sliced.
    """

    def __init__(self, dim_in, dim_out, key,
                 weight_dtype=jnp.bfloat16, out_dtype=jnp.float32):
        self.dim_in = dim_in
        self.dim_out = dim_out
        self.weight_dtype = weight_dtype
        self.out_dtype = out_dtype

        k1, k2, k3, k4 = jax.random.split(key, 4)
        bound = 1.0 / (dim_in ** 0.5)  # matches nn.Linear default init range
        # linear1: (dim_out*dim_out, dim_in) ; linear2: (dim_out, dim_in)
        self.w1 = jax.random.uniform(k1, (dim_out * dim_out, dim_in),
                                     jnp.float32, -bound, bound)
        self.b1 = jax.random.uniform(k2, (dim_out * dim_out,),
                                     jnp.float32, -bound, bound)
        self.w2 = jax.random.uniform(k3, (dim_out, dim_in),
                                     jnp.float32, -bound, bound)
        self.b2 = jax.random.uniform(k4, (dim_out,),
                                     jnp.float32, -bound, bound)

        # Per-head padding (minimal: to 128 only), pre-transpose for x @ W,
        # bf16 weight stream (halves weight HBM traffic), f32 bias.
        self.n1 = dim_out * dim_out
        self.n2 = dim_out
        self.n1_pad = _round_up(self.n1, 128)
        self.n2_pad = _round_up(self.n2, 128)

        w1p = jnp.pad(self.w1, ((0, self.n1_pad - self.n1), (0, 0)))
        self.w1_t = w1p.T.astype(weight_dtype)                       # (dim_in, n1_pad)
        self.b1p = jnp.pad(self.b1, (0, self.n1_pad - self.n1)
                           ).reshape(1, self.n1_pad).astype(jnp.float32)

        w2p = jnp.pad(self.w2, ((0, self.n2_pad - self.n2), (0, 0)))
        self.w2_t = w2p.T.astype(weight_dtype)                       # (dim_in, n2_pad)
        self.b2p = jnp.pad(self.b2, (0, self.n2_pad - self.n2)
                           ).reshape(1, self.n2_pad).astype(jnp.float32)

    def __call__(self, x):
        batch = x.shape[0]
        d = self.dim_out

        y1 = fused_linear_relu(x, self.w1_t, self.b1p, out_dtype=self.out_dtype)
        y2 = fused_linear_relu(x, self.w2_t, self.b2p, out_dtype=self.out_dtype)

        # W head: no slice when d*d is 128-aligned (d % 16 == 0) -> free reshape.
        yW = y1 if self.n1_pad == self.n1 else y1[:, :self.n1]
        W = yW.reshape(batch, d, d)
        B = y2 if self.n2_pad == self.n2 else y2[:, :self.n2]
        return W, B


# ----------------------------------------------------------------------------
# reference & test
# ----------------------------------------------------------------------------

def _reference_quantized(x, mod):
    # f32 math on bf16-rounded operands: matches the kernel's quantization
    # choice (bf16 weight/activation stream, f32 accumulate + epilogue).
    qdt = mod.weight_dtype
    xq = x.astype(qdt).astype(jnp.float32)
    w1q = mod.w1.astype(qdt).astype(jnp.float32)
    w2q = mod.w2.astype(qdt).astype(jnp.float32)
    y1 = jnp.maximum(xq @ w1q.T + mod.b1, 0.0)
    y2 = jnp.maximum(xq @ w2q.T + mod.b2, 0.0)
    return y1.reshape(x.shape[0], mod.dim_out, mod.dim_out), y2


if __name__ == "__main__":
    key = jax.random.PRNGKey(0)
    k_param, k_x = jax.random.split(key)

    batch, dim_in, dim_out = 8, 32, 16
    mod = ParamGeneratorPallas(dim_in, dim_out, k_param)
    x = jax.random.normal(k_x, (batch, dim_in), jnp.float32)

    W, B = mod(x)
    jax.block_until_ready((W, B))

    W_ref, B_ref = _reference_quantized(x, mod)
    assert W.shape == (batch, dim_out, dim_out)
    assert B.shape == (batch, dim_out)
    assert jnp.allclose(jnp.asarray(W, jnp.float32), W_ref, atol=1e-3, rtol=1e-3)
    assert jnp.allclose(jnp.asarray(B, jnp.float32), B_ref, atol=1e-3, rtol=1e-3)

    print("KERNEL_OK")
</pallas_src>

<mosaic_0001>
module attributes {stable_mosaic.version = 11 : i64} {
  func.func @_linear_relu_kernel(%arg0: i32, %arg1: i32, %arg2: memref<16x32xbf16, #tpu.memory_space<vmem>>, %arg3: memref<32x256xbf16, #tpu.memory_space<vmem>>, %arg4: memref<1x256xf32, #tpu.memory_space<vmem>>, %arg5: memref<16x256xf32, #tpu.memory_space<vmem>>) attributes {dimension_semantics = [#tpu.dimension_semantics<parallel>, #tpu.dimension_semantics<arbitrary>], iteration_bounds = array<i64: 1, 1>, scalar_prefetch = 0 : i64, scratch_operands = 0 : i64, tpu.core_type = #tpu.core_type<tc>, window_params = [{transform_indices = @transform_0, window_bounds = array<i64: 16, 32>}, {transform_indices = @transform_1, window_bounds = array<i64: 32, 256>}, {transform_indices = @transform_2, window_bounds = array<i64: 1, 256>}, {transform_indices = @transform_3, window_bounds = array<i64: 16, 256>}]} {
    %c0 = arith.constant 0 : index
    %c0_0 = arith.constant 0 : index
    %0 = vector.load %arg2[%c0, %c0_0] : memref<16x32xbf16, #tpu.memory_space<vmem>>, vector<16x32xbf16>
    %c0_1 = arith.constant 0 : index
    %c0_2 = arith.constant 0 : index
    %1 = vector.load %arg3[%c0_1, %c0_2] : memref<32x256xbf16, #tpu.memory_space<vmem>>, vector<32x256xbf16>
    %cst = arith.constant dense<0.000000e+00> : vector<16x256xf32>
    %2 = tpu.matmul %0, %1, %cst {dimension_numbers = #tpu.dot_dimension_numbers<[1], [0], [0], [1], [0, 0, 1, 1], [], []>} : vector<16x32xbf16>, vector<32x256xbf16>, vector<16x256xf32> -> vector<16x256xf32>
    %c0_3 = arith.constant 0 : index
    %c0_4 = arith.constant 0 : index
    %3 = vector.load %arg4[%c0_3, %c0_4] : memref<1x256xf32, #tpu.memory_space<vmem>>, vector<1x256xf32>
    %4 = vector.broadcast %3 : vector<1x256xf32> to vector<16x256xf32>
    %5 = arith.addf %2, %4 : vector<16x256xf32>
    %cst_5 = arith.constant 0.000000e+00 : f32
    %6 = vector.broadcast %cst_5 : f32 to vector<16x256xf32>
    %7 = arith.maximumf %5, %6 : vector<16x256xf32>
    %c0_6 = arith.constant 0 : index
    %c0_7 = arith.constant 0 : index
    %8 = vector.load %arg5[%c0_6, %c0_7] : memref<16x256xf32, #tpu.memory_space<vmem>>, vector<16x256xf32>
    tpu.vector_store %arg5[%c0_6, %c0_7], %7 {strides = array<i32>} : memref<16x256xf32, #tpu.memory_space<vmem>>, vector<16x256xf32>,
    return
  }
  func.func @transform_0(%arg0: i32, %arg1: i32) -> (i32, i32) {
    %c0_i32 = arith.constant 0 : i32
    %c0_i32_0 = arith.constant 0 : i32
    return %arg1, %c0_i32 : i32, i32
  }
  func.func @transform_1(%arg0: i32, %arg1: i32) -> (i32, i32) {
    %c0_i32 = arith.constant 0 : i32
    %c0_i32_0 = arith.constant 0 : i32
    return %c0_i32, %arg0 : i32, i32
  }
  func.func @transform_2(%arg0: i32, %arg1: i32) -> (i32, i32) {
    %c0_i32 = arith.constant 0 : i32
    %c0_i32_0 = arith.constant 0 : i32
    return %c0_i32, %arg0 : i32, i32
  }
  func.func @transform_3(%arg0: i32, %arg1: i32) -> (i32, i32) {
    %c0_i32 = arith.constant 0 : i32
    return %arg1, %arg0 : i32, i32
  }
}

</mosaic_0001>

<bundles_post_ra>
// kernel: tpu_custom_call.1
= control target key start
LH: loop header
LB: loop body
LE: loop exit
PB: predicated region body
PF: predicated region fallthrough
CT: control target
= control target key end

     0   :  { %8 = vsyncpa [#allocation3], 0  ;;  %s339_s0 = inlined_call_operand.hbm [shape: bf16[16,32], index: 0, kind: input, shape index: {}]   ;;  %s340_s1 = inlined_call_operand.hbm [shape: bf16[32,256], index: 1, kind: input, shape index: {}]   ;;  %s341_s2 = inlined_call_operand.hbm [shape: f32[1,256], index: 2, kind: input, shape index: {}]   ;;  %s342_s3 = inlined_call_operand.hbm [shape: f32[16,256], index: 3, kind: output, shape index: {}]  }
   0x1   :  { %9 = vsyncpa [#allocation6], 0  ;;  %s28_s14 = sshll.u32 %s340_s1, 4  ;;  %s29_s14 = int_to_ptr.hbm [resolvable:$true] %s28_s14 }
   0x2   :  { %10 = vsyncpa [#allocation4], 0  ;;  %s297_s15 = smov [#allocation5]   ;;  %s15_s19 = sshll.u32 %s339_s0, 4  ;;  %s16_s19 = int_to_ptr.hbm [resolvable:$true] %s15_s19 }
   0x3   :  { %s30_s16 = sshll.u32 %s297_s15, 4  ;;  %s298_s20 = smov 128   ;;  %s31_s16 = int_to_ptr.vmem [resolvable:$true] %s30_s16 }
   0x4   :  { %s299_s21 = smov 8   ;;  %s300_s22 = smov [#allocation2]  }
   0x5   :  { %36 = dma.hbm_to_vmem [thread:$0]  %s29_s14, 512, %s31_s16, [#allocation6], %s298_s20, %s298_s20, %s299_s21  }
   0x6   :  { %s17_s23 = sshll.u32 %s300_s22, 4  ;;  %s301_s24 = smov 64   ;;  %s18_s23 = int_to_ptr.vmem [resolvable:$true] %s17_s23 }
   0x7   :  { %s302_s25 = smov 4   ;;  %s42_s27 = sshll.u32 %s341_s2, 4  ;;  %s43_s27 = int_to_ptr.hbm [resolvable:$true] %s42_s27 }
   0x8   :  { %23 = dma.hbm_to_vmem [thread:$0]  %s16_s19, 128, %s18_s23, [#allocation3], %s301_s24, %s301_s24, %s302_s25  }
   0x9   :  { %s303_s28 = smov [#allocation7]  }
   0xa   :  { %s44_s29 = sshll.u32 %s303_s28, 4  ;;  %s45_s29 = int_to_ptr.vmem [resolvable:$true] %s44_s29 }
   0xb   :  { %47 = dma.hbm_to_vmem [thread:$0]  %s43_s27, 32, %s45_s29, [#allocation6]  }
   0xc   :  { %291 = dma.done.wait [#allocation3], 128  }
   0xd   :  { %292 = vsyncadd [#allocation3], 4294967168 }
   0xe   :  { %293 = dma.done.wait [#allocation6], 544  }
   0xf   :  { %294 = vsyncadd [#allocation6], 4294966752  ;;  %v172_v0 = vld [vmem:[#allocation5 + $0x10] sm:$0xf]  ;;  %v184_v1 = vld [vmem:[#allocation5 + $0x14] sm:$0xf0] }
  0x10   :  { %v183_v2 = vld [vmem:[#allocation5 + $0x14] sm:$0xf]  ;;  %v173_v3 = vor.u32 %v184_v1, %v172_v0  ;;  %v174_v4 = vld [vmem:[#allocation5 + $0x18] sm:$0xf0]  ;;  %v164_v5 = vld [vmem:[#allocation5] sm:$0xf] }
  0x11   :  { %v182_v6 = vld [vmem:[#allocation5 + $0x4] sm:$0xf0]  ;;  %v177_v7 = vor.u32 %v183_v2, %v174_v4  ;;  %v181_v8 = vld [vmem:[#allocation5 + $0x4] sm:$0xf]  ;;  %v166_v9 = vld [vmem:[#allocation5 + $0x8] sm:$0xf0] }
  0x12   :  { %108 = vmatpush.bf16.msra.mxu0 %v173_v3  ;;  %v165_v10 = vor.u32 %v182_v6, %v164_v5  ;;  %v169_v11 = vor.u32 %v181_v8, %v166_v9  ;;  %v180_v12 = vld [vmem:[#allocation2] sm:$0xff]  ;;  %vm98_vm0 = vcmask 261120   ;;  %v67_v13 = vld [vmem:[#allocation7] sm:$0x3]  ;;  %s304_s0 = smov [#allocation8]   ;;  %s144_s5 = sshll.u32 %s342_s3, 4  ;;  %s145_s5 = int_to_ptr.hbm [resolvable:$true] %s144_s5 }
  0x13   :  { %122 = vmatpush.bf16.msra.mxu1 %v177_v7  ;;  %v69_v14 = vperm.slane %v67_v13, 0  ;;  %v70_v15 = vperm.slane %v67_v13, 1  ;;  %s142_s2 = sshll.u32 %s304_s0, 4  ;;  %s305_s6 = smov 256   ;;  %s143_s2 = int_to_ptr.vmem [resolvable:$true] %s142_s2 }
  0x14   :  { %s306_s7 = smov 16  }
  0x16   :  { %109 = vmatpush.bf16.msra.mxu0 %v165_v10 }
  0x17   :  { %123 = vmatpush.bf16.msra.mxu1 %v169_v11 }
  0x19   :  { %178 = vmatmul.msk.bf16.vlgmr.msra.gmra.mxu0 %vm98_vm0, %v180_v12 }
  0x1a   :  { %179 = vmatmul.msk.bf16.vlgmr.msra.gmra.mxu1 %vm98_vm0, %v180_v12 }
  0x96   :  { %v111_v16 = vpop.f32.mrf.mxu0 }
  0x97   :  { %v112_v17 = vadd.f32 %v111_v16, %v69_v14  ;;  %v125_v18 = vpop.f32.mrf.mxu1 }
  0x98   :  { %v126_v19 = vadd.f32 %v125_v18, %v70_v15 }
  0x99   :  { %v130_v20 = vmax.f32 %v112_v17, 0.0 }
  0x9a   :  { %v131_v21 = vmax.f32 %v126_v19, 0.0 }
  0x9b   :  { %134 = vst [vmem:[#allocation8] sm:$0xff] %v130_v20 }
  0x9c   :  { %135 = vst [vmem:[#allocation8 + $0x8] sm:$0xff] %v131_v21 }
  0x9e   :  { %v113_v22 = vpop.f32.mrf.mxu0 }
  0x9f   :  { %v114_v23 = vadd.f32 %v113_v22, %v69_v14  ;;  %v127_v24 = vpop.f32.mrf.mxu1 }
  0xa0   :  { %v128_v25 = vadd.f32 %v127_v24, %v70_v15 }
  0xa1   :  { %v132_v26 = vmax.f32 %v114_v23, 0.0 }
  0xa2   :  { %v133_v27 = vmax.f32 %v128_v25, 0.0 }
  0xa3   :  { %136 = vst [vmem:[#allocation8 + $0x10] sm:$0xff] %v132_v26 }
  0xa4   :  { %137 = vst [vmem:[#allocation8 + $0x18] sm:$0xff] %v133_v27 }
  0xa5   :  { %150 = dma.vmem_to_hbm [thread:$0]  %s143_s2, 512, %s145_s5, [#allocation4], %s305_s6, %s305_s6, %s306_s7  }
  0xa6   :  { %295 = dma.done.wait [#allocation4], 512  }
  0xa7   :  { %296 = vsyncadd [#allocation4], 4294966784 }
  0xa8   :  { %155 = vsyncpa [#allocation3], 1 }
  0xa9   :  { %156 = vsyncpa [#allocation6], 1 }
  0xaa   :  { %157 = vsyncpa [#allocation4], 1 }

</bundles_post_ra>
